<compile_context>
chip_gen: v6e
topology: v6e:2x2x1
jax: 0.10.0
libtpu: 0.0.40
codegen_flags: <defaults>
</compile_context>

<pallas_src>
import functools

import jax
import jax.numpy as jnp
from jax.experimental import pallas as pl
from jax.experimental.pallas import tpu as pltpu


# ----------------------------------------------------------------------------
# Stage 1: streaming global max+avg pool over the spatial axis
# ----------------------------------------------------------------------------
def _pool_kernel(x0_ref, x1_ref, pooled_ref, max_acc, sum_acc, *, inv_hw):
    hw_idx = pl.program_id(1)
    n_hw = pl.num_programs(1)

    @pl.when(hw_idx == 0)
    def _():
        max_acc[...] = jnp.full_like(max_acc, -jnp.inf)
        sum_acc[...] = jnp.zeros_like(sum_acc)

    # Fuse the add directly into the reduction update; no materialized x=x0+x1
    # scratch tile (keeps the inner loop to load + add + max + add-accumulate).
    t = x0_ref[...].astype(jnp.float32) + x1_ref[...].astype(jnp.float32)
    max_acc[...] = jnp.maximum(max_acc[...], jnp.max(t, axis=-1))
    sum_acc[...] = sum_acc[...] + jnp.sum(t, axis=-1)

    @pl.when(hw_idx == n_hw - 1)
    def _():
        # mean = sum * (1/HW) only in the finalize epilogue.
        pooled_ref[...] = max_acc[...] + sum_acc[...] * inv_hw


# ----------------------------------------------------------------------------
# Stage 2: the six tiny 1x1-conv matmuls (fc -> fc0 / fc1 -> sigmoid)
# ----------------------------------------------------------------------------
def _mlp_kernel(p_ref, w_fc1_ref, w_fc2_ref, w0a_ref, w0b_ref, w1a_ref,
                w1b_ref, out_ref):
    p = p_ref[...]                                                   # (N, C)

    h = jnp.dot(p, w_fc1_ref[...], preferred_element_type=jnp.float32)
    h = jnp.maximum(h, 0.0)
    fusion = jnp.dot(h, w_fc2_ref[...], preferred_element_type=jnp.float32)

    h0 = jnp.maximum(
        jnp.dot(fusion, w0a_ref[...], preferred_element_type=jnp.float32), 0.0)
    b0 = jax.nn.sigmoid(
        jnp.dot(h0, w0b_ref[...], preferred_element_type=jnp.float32))

    h1 = jnp.maximum(
        jnp.dot(fusion, w1a_ref[...], preferred_element_type=jnp.float32), 0.0)
    b1 = jax.nn.sigmoid(
        jnp.dot(h1, w1b_ref[...], preferred_element_type=jnp.float32))

    # Single lane-dense slab instead of two narrow (N, C) outputs.
    out_ref[...] = jnp.concatenate([b0, b1], axis=-1)                # (N, 2C)


# ----------------------------------------------------------------------------
# Tiling helpers
# ----------------------------------------------------------------------------
def _largest_divisor_tile(dim, quantum, cap):
    """Largest multiple of `quantum` <= cap that evenly divides `dim`; else full dim."""
    cap = max(quantum, min(cap, dim))
    best = None
    cand = quantum
    while cand <= cap:
        if dim % cand == 0:
            best = cand
        cand += quantum
    return best if best is not None else dim


# ----------------------------------------------------------------------------
# Wrapper
# ----------------------------------------------------------------------------
def adaptive_selective_block_13(x0, x1, params):
    """x0, x1: (N, C, H, W).  Returns [branch_0, branch_1], each (N, C, 1, 1) f32."""
    N, C, H, W = x0.shape
    HW = H * W

    # No wrapper up-cast: keep the producer dtype (bf16 halves HBM traffic);
    # the kernel casts per-tile to f32 for accumulation.
    x0f = x0.reshape(N, C, HW)
    x1f = x1.reshape(N, C, HW)
    itemsize = x0f.dtype.itemsize

    # Channel tile: multiple of 128 (legal lane dim for the (N, C) output and
    # sublane dim for the input block), else the full C extent.
    tc = _largest_divisor_tile(C, 128, 512)

    # Spatial tile: multiple of 128, sized so one input buffer stays within a
    # per-buffer budget (2 inputs x 2 pipeline buffers must sit comfortably
    # inside v7x's 64 MiB VMEM); else the full HW extent.
    per_buf_budget = 6 * 1024 * 1024
    thw_cap = max(128, per_buf_budget // max(1, N * tc * itemsize))
    thw = _largest_divisor_tile(HW, 128, thw_cap)

    grid = (C // tc, HW // thw)

    pooled = pl.pallas_call(
        functools.partial(_pool_kernel, inv_hw=1.0 / float(HW)),
        out_shape=jax.ShapeDtypeStruct((N, C), jnp.float32),
        grid_spec=pltpu.PrefetchScalarGridSpec(
            num_scalar_prefetch=0,
            grid=grid,
            in_specs=[
                pl.BlockSpec((N, tc, thw), lambda ci, hi: (0, ci, hi)),
                pl.BlockSpec((N, tc, thw), lambda ci, hi: (0, ci, hi)),
            ],
            out_specs=pl.BlockSpec((N, tc), lambda ci, hi: (0, ci)),
            scratch_shapes=[
                pltpu.VMEM((N, tc), jnp.float32),   # running max
                pltpu.VMEM((N, tc), jnp.float32),   # running sum
            ],
        ),
        compiler_params=pltpu.CompilerParams(
            dimension_semantics=("parallel", "arbitrary"),
            vmem_limit_bytes=48 * 1024 * 1024,
        ),
    )(x0f, x1f)

    # 1x1 conv weights (out, in) -> pre-transpose to (in, out) so y = p @ w.
    w_fc1 = params["fc_w1"].T     # (C, C//8)
    w_fc2 = params["fc_w2"].T     # (C//8, C)
    w0a = params["fc0_w1"].T      # (C, C//16)
    w0b = params["fc0_w2"].T      # (C//16, C)
    w1a = params["fc1_w1"].T      # (C, C//16)
    w1b = params["fc1_w2"].T      # (C//16, C)

    vmem_spec = pl.BlockSpec(memory_space=pltpu.MemorySpace.VMEM)
    b01 = pl.pallas_call(
        _mlp_kernel,
        out_shape=jax.ShapeDtypeStruct((N, 2 * C), jnp.float32),
        in_specs=[vmem_spec] * 7,
        out_specs=vmem_spec,
    )(pooled, w_fc1, w_fc2, w0a, w0b, w1a, w1b)

    branch_0 = b01[:, :C].reshape(N, C, 1, 1)
    branch_1 = b01[:, C:].reshape(N, C, 1, 1)
    return [branch_0, branch_1]


# ----------------------------------------------------------------------------
# Params + pure-JAX reference
# ----------------------------------------------------------------------------
def init_params(key, in_planes):
    """Deterministic synthetic init matching the PyTorch module's weight shapes."""
    c8 = in_planes // 8
    c16 = in_planes // 16
    ks = jax.random.split(key, 6)

    def w(k, out_c, in_c):
        # Conv2d(in_c, out_c, 1, bias=False) weight (out_c, in_c, 1, 1) -> (out_c, in_c)
        return jax.random.normal(k, (out_c, in_c), jnp.float32) * 0.1

    return {
        "fc_w1":  w(ks[0], c8, in_planes),
        "fc_w2":  w(ks[1], in_planes, c8),
        "fc0_w1": w(ks[2], c16, in_planes),
        "fc0_w2": w(ks[3], in_planes, c16),
        "fc1_w1": w(ks[4], c16, in_planes),
        "fc1_w2": w(ks[5], in_planes, c16),
    }


def _reference(x0, x1, params):
    x = (x0 + x1).astype(jnp.float32)
    mx = jnp.max(x, axis=(2, 3))
    av = jnp.mean(x, axis=(2, 3))
    p = mx + av                                        # (N, C)
    h = jnp.maximum(p @ params["fc_w1"].T, 0.0)
    fusion = h @ params["fc_w2"].T
    h0 = jnp.maximum(fusion @ params["fc0_w1"].T, 0.0)
    b0 = jax.nn.sigmoid(h0 @ params["fc0_w2"].T)
    h1 = jnp.maximum(fusion @ params["fc1_w1"].T, 0.0)
    b1 = jax.nn.sigmoid(h1 @ params["fc1_w2"].T)
    N, C = b0.shape
    return [b0.reshape(N, C, 1, 1), b1.reshape(N, C, 1, 1)]


if __name__ == "__main__":
    key = jax.random.PRNGKey(0)
    k0, k1, kp = jax.random.split(key, 3)

    N, C, H, W = 2, 32, 8, 8          # in_planes=32 so C//8=4, C//16=2
    x0 = jax.random.normal(k0, (N, C, H, W), jnp.float32)
    x1 = jax.random.normal(k1, (N, C, H, W), jnp.float32)
    params = init_params(kp, C)

    out0, out1 = adaptive_selective_block_13(x0, x1, params)
    jax.block_until_ready(out0)
    jax.block_until_ready(out1)

    ref0, ref1 = _reference(x0, x1, params)
    assert out0.shape == (N, C, 1, 1) and out1.shape == (N, C, 1, 1)
    assert jnp.allclose(out0, ref0, atol=1e-5, rtol=1e-5)
    assert jnp.allclose(out1, ref1, atol=1e-5, rtol=1e-5)

    print("KERNEL_OK")
</pallas_src>

<mosaic_0001>
module attributes {stable_mosaic.version = 11 : i64} {
  func.func @_pool_kernel(%arg0: i32, %arg1: i32, %arg2: memref<2x32x64xf32, #tpu.memory_space<vmem>>, %arg3: memref<2x32x64xf32, #tpu.memory_space<vmem>>, %arg4: memref<2x32xf32, #tpu.memory_space<vmem>>, %arg5: memref<2x32xf32, #tpu.memory_space<vmem>>, %arg6: memref<2x32xf32, #tpu.memory_space<vmem>>) attributes {dimension_semantics = [#tpu.dimension_semantics<parallel>, #tpu.dimension_semantics<arbitrary>], iteration_bounds = array<i64: 1, 1>, scalar_prefetch = 0 : i64, scratch_operands = 2 : i64, tpu.core_type = #tpu.core_type<tc>, window_params = [{transform_indices = @transform_0, window_bounds = array<i64: 2, 32, 64>}, {transform_indices = @transform_1, window_bounds = array<i64: 2, 32, 64>}, {transform_indices = @transform_2, window_bounds = array<i64: 2, 32>}]} {
    %c0_i32 = arith.constant 0 : i32
    %0 = arith.cmpi eq, %arg1, %c0_i32 : i32
    %1 = arith.extui %0 : i1 to i32
    %c0_i32_0 = arith.constant 0 : i32
    %2 = arith.cmpi ne, %1, %c0_i32_0 : i32
    scf.if %2 {
      %cst_17 = arith.constant 0xFF800000 : f32
      %17 = vector.broadcast %cst_17 : f32 to vector<2x32xf32>
      %c0_18 = arith.constant 0 : index
      %c0_19 = arith.constant 0 : index
      %18 = vector.load %arg5[%c0_18, %c0_19] : memref<2x32xf32, #tpu.memory_space<vmem>>, vector<2x32xf32>
      tpu.vector_store %arg5[%c0_18, %c0_19], %17 {strides = array<i32>} : memref<2x32xf32, #tpu.memory_space<vmem>>, vector<2x32xf32>,
      %cst_20 = arith.constant 0.000000e+00 : f32
      %19 = vector.broadcast %cst_20 : f32 to vector<2x32xf32>
      %c0_21 = arith.constant 0 : index
      %c0_22 = arith.constant 0 : index
      %20 = vector.load %arg6[%c0_21, %c0_22] : memref<2x32xf32, #tpu.memory_space<vmem>>, vector<2x32xf32>
      tpu.vector_store %arg6[%c0_21, %c0_22], %19 {strides = array<i32>} : memref<2x32xf32, #tpu.memory_space<vmem>>, vector<2x32xf32>,
    } else {
    }
    %c0 = arith.constant 0 : index
    %c0_1 = arith.constant 0 : index
    %c0_2 = arith.constant 0 : index
    %3 = vector.load %arg2[%c0, %c0_1, %c0_2] : memref<2x32x64xf32, #tpu.memory_space<vmem>>, vector<2x32x64xf32>
    %c0_3 = arith.constant 0 : index
    %c0_4 = arith.constant 0 : index
    %c0_5 = arith.constant 0 : index
    %4 = vector.load %arg3[%c0_3, %c0_4, %c0_5] : memref<2x32x64xf32, #tpu.memory_space<vmem>>, vector<2x32x64xf32>
    %5 = arith.addf %3, %4 : vector<2x32x64xf32>
    %c0_6 = arith.constant 0 : index
    %c0_7 = arith.constant 0 : index
    %6 = vector.load %arg5[%c0_6, %c0_7] : memref<2x32xf32, #tpu.memory_space<vmem>>, vector<2x32xf32>
    %cst = arith.constant dense<0xFF800000> : vector<2x32xf32>
    %7 = vector.multi_reduction <maximumf>, %5, %cst [2] : vector<2x32x64xf32> to vector<2x32xf32>
    %8 = arith.maximumf %6, %7 : vector<2x32xf32>
    %c0_8 = arith.constant 0 : index
    %c0_9 = arith.constant 0 : index
    %9 = vector.load %arg5[%c0_8, %c0_9] : memref<2x32xf32, #tpu.memory_space<vmem>>, vector<2x32xf32>
    tpu.vector_store %arg5[%c0_8, %c0_9], %8 {strides = array<i32>} : memref<2x32xf32, #tpu.memory_space<vmem>>, vector<2x32xf32>,
    %c0_10 = arith.constant 0 : index
    %c0_11 = arith.constant 0 : index
    %10 = vector.load %arg6[%c0_10, %c0_11] : memref<2x32xf32, #tpu.memory_space<vmem>>, vector<2x32xf32>
    %cst_12 = arith.constant dense<0.000000e+00> : vector<2x32xf32>
    %11 = vector.multi_reduction <add>, %5, %cst_12 [2] : vector<2x32x64xf32> to vector<2x32xf32>
    %12 = arith.addf %10, %11 : vector<2x32xf32>
    %c0_13 = arith.constant 0 : index
    %c0_14 = arith.constant 0 : index
    %13 = vector.load %arg6[%c0_13, %c0_14] : memref<2x32xf32, #tpu.memory_space<vmem>>, vector<2x32xf32>
    tpu.vector_store %arg6[%c0_13, %c0_14], %12 {strides = array<i32>} : memref<2x32xf32, #tpu.memory_space<vmem>>, vector<2x32xf32>,
    %c0_i32_15 = arith.constant 0 : i32
    %14 = arith.cmpi eq, %arg1, %c0_i32_15 : i32
    %15 = arith.extui %14 : i1 to i32
    %c0_i32_16 = arith.constant 0 : i32
    %16 = arith.cmpi ne, %15, %c0_i32_16 : i32
    scf.if %16 {
      %c0_17 = arith.constant 0 : index
      %c0_18 = arith.constant 0 : index
      %17 = vector.load %arg5[%c0_17, %c0_18] : memref<2x32xf32, #tpu.memory_space<vmem>>, vector<2x32xf32>
      %c0_19 = arith.constant 0 : index
      %c0_20 = arith.constant 0 : index
      %18 = vector.load %arg6[%c0_19, %c0_20] : memref<2x32xf32, #tpu.memory_space<vmem>>, vector<2x32xf32>
      %cst_21 = arith.constant 1.562500e-02 : f32
      %19 = vector.broadcast %cst_21 : f32 to vector<2x32xf32>
      %20 = arith.mulf %18, %19 : vector<2x32xf32>
      %21 = arith.addf %17, %20 : vector<2x32xf32>
      %c0_22 = arith.constant 0 : index
      %c0_23 = arith.constant 0 : index
      %22 = vector.load %arg4[%c0_22, %c0_23] : memref<2x32xf32, #tpu.memory_space<vmem>>, vector<2x32xf32>
      tpu.vector_store %arg4[%c0_22, %c0_23], %21 {strides = array<i32>} : memref<2x32xf32, #tpu.memory_space<vmem>>, vector<2x32xf32>,
    } else {
    }
    return
  }
  func.func @transform_0(%arg0: i32, %arg1: i32) -> (i32, i32, i32) {
    %c0_i32 = arith.constant 0 : i32
    %c0_i32_0 = arith.constant 0 : i32
    return %c0_i32, %arg0, %arg1 : i32, i32, i32
  }
  func.func @transform_1(%arg0: i32, %arg1: i32) -> (i32, i32, i32) {
    %c0_i32 = arith.constant 0 : i32
    %c0_i32_0 = arith.constant 0 : i32
    return %c0_i32, %arg0, %arg1 : i32, i32, i32
  }
  func.func @transform_2(%arg0: i32, %arg1: i32) -> (i32, i32) {
    %c0_i32 = arith.constant 0 : i32
    %c0_i32_0 = arith.constant 0 : i32
    return %c0_i32, %arg0 : i32, i32
  }
}

</mosaic_0001>

<bundles_post_ra>
// kernel: tpu_custom_call.1
= control target key start
LH: loop header
LB: loop body
LE: loop exit
PB: predicated region body
PF: predicated region fallthrough
CT: control target
= control target key end

     0   :  { %7 = vsyncpa [#allocation5], 0  ;;  %s395_s0 = inlined_call_operand.hbm [shape: f32[2,32,64], index: 0, kind: input, shape index: {}]   ;;  %s396_s1 = inlined_call_operand.hbm [shape: f32[2,32,64], index: 1, kind: input, shape index: {}]   ;;  %s397_s2 = inlined_call_operand.hbm [shape: f32[2,32], index: 2, kind: output, shape index: {}]  }
   0x1   :  { %8 = vsyncpa [#allocation8], 0 }
   0x2   :  { %9 = vsyncpa [#allocation6], 0  ;;  %s329_s9 = smov [#allocation4]  }
   0x3   :  { %s15_s10 = sshll.u32 %s329_s9, 4  ;;  %s16_s10 = int_to_ptr.vmem [resolvable:$true] %s15_s10 }
   0x4   :  { %s271_s11 = scalar_lea.vmem %s16_s10, 1024  ;;  %p276_p1 = scmp.lt.s32.totalorder %s16_s10, %s16_s10 }
   0x5   :  { %p272_p0 = scmp.ne.s32.totalorder %s16_s10, %s271_s11  ;;  %p277_p2 = scmp.lt.s32.totalorder %s271_s11, %s271_s11 }
   0x7   :  { %p278_p3 = por %p277_p2, %p276_p1 }
   0x9   :  { %p279_p4 = pnand %p278_p3, %p272_p0 }
   0xb   :  { %282 = shalt.err (!%p279_p4)
}
   0xc   :  { %s330_s12 = smov 128   ;;  %s331_s13 = smov 8  }
   0xd   :  { %21 = dma.hbm_to_vmem [thread:$0]  %s395_s0, 1024, %s16_s10, [#allocation5], %s330_s12, %s330_s12, %s331_s13  }
   0xe   :  { %s332_s16 = smov [#allocation7]  }
   0xf   :  { %s27_s17 = sshll.u32 %s332_s16, 4  ;;  %s28_s17 = int_to_ptr.vmem [resolvable:$true] %s27_s17 }
  0x10   :  { %s291_s18 = scalar_lea.vmem %s28_s17, 1024  ;;  %p296_p6 = scmp.lt.s32.totalorder %s28_s17, %s28_s17 }
  0x11   :  { %p292_p5 = scmp.ne.s32.totalorder %s28_s17, %s291_s18  ;;  %p297_p7 = scmp.lt.s32.totalorder %s291_s18, %s291_s18 }
  0x13   :  { %p298_p8 = por %p297_p7, %p296_p6 }
  0x15   :  { %p299_p9 = pnand %p298_p8, %p292_p5 }
  0x17   :  { %302 = shalt.err (!%p299_p9)
}
  0x18   :  { %33 = dma.hbm_to_vmem [thread:$0]  %s396_s1, 1024, %s28_s17, [#allocation8], %s330_s12, %s330_s12, %s331_s13  }
  0x19   :  { %323 = dma.done.wait [#allocation5], 1024  }
  0x1a   :  { %324 = vsyncadd [#allocation5], 4294966272 }
  0x1b   :  { %325 = dma.done.wait [#allocation8], 1024  }
  0x1c   :  { %326 = vsyncadd [#allocation8], 4294966272  ;;  %v51_v0 = vld [vmem:[#allocation4 + $0x20] sm:$0xff]  ;;  %vm72_vm0 = vcmask 523264   ;;  %v52_v5 = vld [vmem:[#allocation4 + $0x28] sm:$0xff]  ;;  %vm44_vm1 = vcmask 254976   ;;  %v105_v44 = vlaneseq }
  0x1d   :  { %v59_v1 = vld [vmem:[#allocation7 + $0x20] sm:$0xff]  ;;  %v60_v6 = vld [vmem:[#allocation7 + $0x28] sm:$0xff]  ;;  %v53_v11 = vld [vmem:[#allocation4 + $0x30] sm:$0xff]  ;;  %v333_v40 = vmov 0.0   ;;  %v334_v41 = vmov -inf   ;;  %vm116_vm2 = vcmask 130112  }
  0x1e   :  { %v47_v2 = vld [vmem:[#allocation4] sm:$0xff]  ;;  %v67_v3 = vadd.f32 %v59_v1, %v51_v0  ;;  %v68_v8 = vadd.f32 %v60_v6, %v52_v5  ;;  %v48_v9 = vld [vmem:[#allocation4 + $0x8] sm:$0xff]  ;;  %v61_v14 = vld [vmem:[#allocation7 + $0x30] sm:$0xff]  ;;  %46 = vst.msk [vmem:[#allocation3] sm:$0x3] %vm44_vm1, %v333_v40  ;;  %v106_v47 = vand.u32 127, %v105_v44 }
  0x1f   :  { %v55_v4 = vld [vmem:[#allocation7] sm:$0xff]  ;;  %v56_v10 = vld [vmem:[#allocation7 + $0x8] sm:$0xff]  ;;  %v49_v15 = vld [vmem:[#allocation4 + $0x10] sm:$0xff]  ;;  %v69_v19 = vadd.f32 %v61_v14, %v53_v11  ;;  %45 = vst.msk [vmem:[#allocation2] sm:$0x3] %vm44_vm1, %v334_v41  ;;  %v108_v52 = vshrl.u32 %v105_v44, 7 }
  0x20   :  { %v63_v7 = vadd.f32 %v55_v4, %v47_v2  ;;  %v170_v12 = vsel %vm72_vm0, %v67_v3, 0.0  ;;  %v64_v13 = vadd.f32 %v56_v10, %v48_v9  ;;  %v57_v16 = vld [vmem:[#allocation7 + $0x10] sm:$0xff]  ;;  %v173_v18 = vsel %vm72_vm0, %v68_v8, 0.0  ;;  %v54_v26 = vld [vmem:[#allocation4 + $0x38] sm:$0xff]  ;;  %s335_s0 = smov [#allocation9]  }
  0x21   :  { %171 = vadd.xlane.f32.xlu1 %v170_v12  ;;  %v65_v21 = vadd.f32 %v57_v16, %v49_v15  ;;  %v176_v22 = vsel %vm72_vm0, %v69_v19, 0.0  ;;  %v62_v27 = vld [vmem:[#allocation7 + $0x38] sm:$0xff]  ;;  %v88_v30 = vsel %vm72_vm0, %v68_v8, -inf  ;;  %v85_v32 = vsel %vm72_vm0, %v67_v3, -inf  ;;  %s246_s1 = sshll.u32 %s335_s0, 4  ;;  %s247_s1 = int_to_ptr.vmem [resolvable:$true] %s246_s1 }
  0x22   :  { %v158_v17 = vsel %vm72_vm0, %v63_v7, 0.0  ;;  %v161_v20 = vsel %vm72_vm0, %v64_v13, 0.0  ;;  %v76_v24 = vsel %vm72_vm0, %v64_v13, -inf  ;;  %v73_v25 = vsel %vm72_vm0, %v63_v7, -inf  ;;  %v50_v28 = vld [vmem:[#allocation4 + $0x18] sm:$0xff]  ;;  %s303_s21 = scalar_lea.vmem %s247_s1, 32  ;;  %p308_p11 = scmp.lt.s32.totalorder %s247_s1, %s247_s1 }
  0x23   :  { %159 = vadd.xlane.f32.xlu0 %v158_v17  ;;  %v164_v23 = vsel %vm72_vm0, %v65_v21, 0.0  ;;  %v58_v29 = vld [vmem:[#allocation7 + $0x18] sm:$0xff]  ;;  %v70_v31 = vadd.f32 %v62_v27, %v54_v26  ;;  %v91_v36 = vsel %vm72_vm0, %v69_v19, -inf  ;;  %v79_v37 = vsel %vm72_vm0, %v65_v21, -inf  ;;  %p304_p10 = scmp.ne.s32.totalorder %s247_s1, %s303_s21  ;;  %p309_p12 = scmp.lt.s32.totalorder %s303_s21, %s303_s21 }
  0x24   :  { %v66_v33 = vadd.f32 %v58_v29, %v50_v28  ;;  %v111_v49 = vadd.s32 4294967288, %v106_v47  ;;  %v118_v51 = vadd.s32 4294967280, %v106_v47  ;;  %v125_v56 = vadd.s32 4294967272, %v106_v47 }
  0x25   :  { %174 = vadd.xlane.f32.xlu1 %v173_v18  ;;  %v179_v34 = vsel %vm72_vm0, %v70_v31, 0.0  ;;  %v94_v38 = vsel %vm72_vm0, %v70_v31, -inf  ;;  %v109_v58 = vsub.s32 %v106_v47, %v108_v52  ;;  %vm123_vm3 = vcmask 195712   ;;  %v157_v13 = vld [vmem:[#allocation3] sm:$0x3]  ;;  %p310_p13 = por %p309_p12, %p308_p11 }
  0x26   :  { %v167_v35 = vsel %vm72_vm0, %v66_v33, 0.0  ;;  %v82_v39 = vsel %vm72_vm0, %v66_v33, -inf  ;;  %v114_v54 = vsub.s32 %v111_v49, %v108_v52  ;;  %v121_v57 = vsub.s32 %v118_v51, %v108_v52 }
  0x27   :  { %162 = vadd.xlane.f32.xlu0 %v161_v20  ;;  %v128_v62 = vsub.s32 %v125_v56, %v108_v52  ;;  %vm130_vm4 = vcmask 261312   ;;  %vm151_vm5 = vcmask 1041409   ;;  %p311_p0 = pnand %p310_p13, %p304_p10 }
  0x29   :  { %177 = vadd.xlane.f32.xlu1 %v176_v22 }
  0x2b   :  { %165 = vadd.xlane.f32.xlu0 %v164_v23 }
  0x2d   :  { %77 = vmax.xlane.f32.xlu1 %v76_v24 }
  0x2f   :  { %74 = vmax.xlane.f32.xlu0 %v73_v25 }
  0x31   :  { %89 = vmax.xlane.f32.xlu1 %v88_v30 }
  0x33   :  { %86 = vmax.xlane.f32.xlu0 %v85_v32 }
  0x35   :  { %180 = vadd.xlane.f32.xlu1 %v179_v34  ;;  %v71_v34 = vld [vmem:[#allocation2] sm:$0x3] }
  0x37   :  { %168 = vadd.xlane.f32.xlu0 %v167_v35 }
  0x39   :  { %92 = vmax.xlane.f32.xlu1 %v91_v36 }
  0x3b   :  { %80 = vmax.xlane.f32.xlu0 %v79_v37 }
  0x3d   :  { %95 = vmax.xlane.f32.xlu1 %v94_v38 }
  0x3f   :  { %83 = vmax.xlane.f32.xlu0 %v82_v39 }
  0xaa   :  { %v172_v42 = vpop.xlane.xlu1 %171 }
  0xab   :  { %v212_v1 = vrot.slane %v172_v42, %v109_v58 }
  0xac   :  { %v160_v43 = vpop.xlane.xlu0 %159 }
  0xad   :  { %v193_v3 = vrot.slane %v160_v43, %v109_v58 }
  0xae   :  { %v175_v45 = vpop.xlane.xlu1 %174 }
  0xaf   :  { %v216_v60 = vrot.slane %v175_v45, %v114_v54 }
  0xb0   :  { %v163_v46 = vpop.xlane.xlu0 %162 }
  0xb1   :  { %v197_v63 = vrot.slane %v163_v46, %v114_v54  ;;  %v217_v5 = vsel %vm116_vm2, %v216_v60, %v212_v1 }
  0xb2   :  { %v178_v48 = vpop.xlane.xlu1 %177 }
  0xb3   :  { %v221_v0 = vrot.slane %v178_v48, %v121_v57  ;;  %v198_v8 = vsel %vm116_vm2, %v197_v63, %v193_v3 }
  0xb4   :  { %v166_v50 = vpop.xlane.xlu0 %165 }
  0xb5   :  { %v202_v2 = vrot.slane %v166_v50, %v121_v57  ;;  %v222_v9 = vsel %vm123_vm3, %v221_v0, %v217_v5 }
  0xb6   :  { %v78_v53 = vpop.xlane.xlu1 %77 }
  0xb7   :  { %v203_v11 = vsel %vm123_vm3, %v202_v2, %v198_v8  ;;  %v115_v20 = vrot.slane %v78_v53, %v114_v54 }
  0xb8   :  { %v75_v55 = vpop.xlane.xlu0 %74 }
  0xb9   :  { %v110_v21 = vrot.slane %v75_v55, %v109_v58 }
  0xba   :  { %v90_v59 = vpop.xlane.xlu1 %89 }
  0xbb   :  { %v139_v16 = vrot.slane %v90_v59, %v114_v54  ;;  %v117_v29 = vsel %vm116_vm2, %v115_v20, %v110_v21 }
  0xbc   :  { %v87_v61 = vpop.xlane.xlu0 %86 }
  0xbd   :  { %v135_v17 = vrot.slane %v87_v61, %v109_v58 }
  0xbe   :  { %v181_v4 = vpop.xlane.xlu1 %180 }
  0xbf   :  { %v226_v6 = vrot.slane %v181_v4, %v128_v62  ;;  %v140_v26 = vsel %vm116_vm2, %v139_v16, %v135_v17 }
  0xc0   :  { %v169_v7 = vpop.xlane.xlu0 %168 }
  0xc1   :  { %v207_v10 = vrot.slane %v169_v7, %v128_v62  ;;  %v227_v12 = vsel %vm130_vm4, %v226_v6, %v222_v9 }
  0xc2   :  { %v93_v15 = vpop.xlane.xlu1 %92 }
  0xc3   :  { %v208_v14 = vsel %vm130_vm4, %v207_v10, %v203_v11  ;;  %v144_v22 = vrot.slane %v93_v15, %v121_v57 }
  0xc4   :  { %v228_v18 = vsel %vm151_vm5, %v227_v12, %v208_v14  ;;  %v81_v19 = vpop.xlane.xlu0 %80 }
  0xc5   :  { %v230_v23 = vadd.f32 %v228_v18, %v157_v13  ;;  %v122_v24 = vrot.slane %v81_v19, %v121_v57  ;;  %v145_v30 = vsel %vm123_vm3, %v144_v22, %v140_v26 }
  0xc6   :  { %v96_v25 = vpop.xlane.xlu1 %95 }
  0xc7   :  { %231 = vst.msk [vmem:[#allocation3] sm:$0x3] %vm44_vm1, %v230_v23  ;;  %v149_v27 = vrot.slane %v96_v25, %v128_v62  ;;  %v124_v32 = vsel %vm123_vm3, %v122_v24, %v117_v29 }
  0xc8   :  { %v84_v28 = vpop.xlane.xlu0 %83 }
  0xc9   :  { %v129_v31 = vrot.slane %v84_v28, %v128_v62  ;;  %v150_v33 = vsel %vm130_vm4, %v149_v27, %v145_v30 }
  0xcb   :  { %v131_v35 = vsel %vm130_vm4, %v129_v31, %v124_v32 }
  0xcc   :  { %v152_v36 = vsel %vm151_vm5, %v150_v33, %v131_v35 }
  0xcd   :  { %v154_v37 = vmax.f32 %v71_v34, %v152_v36 }
  0xce   :  { %v236_v38 = vld [vmem:[#allocation3] sm:$0x3] }
  0xcf   :  { %156 = vst.msk [vmem:[#allocation2] sm:$0x3] %vm44_vm1, %v154_v37  ;;  %v237_v39 = vmul.f32 0.015625, %v236_v38 }
  0xd6   :  { %v235_v40 = vld [vmem:[#allocation2] sm:$0x3] }
  0xd7   :  { %v238_v41 = vadd.f32 %v237_v39, %v235_v40 }
  0xd9   :  { %239 = vst.msk [vmem:[#allocation9] sm:$0x3] %vm44_vm1, %v238_v41 }
  0xda   :  { %314 = shalt.err (!%p311_p0)
}
  0xdb   :  { %249 = dma.vmem_to_hbm [thread:$0]  %s247_s1, 32, %s397_s2, [#allocation6]  }
  0xdc   :  { %327 = dma.done.wait [#allocation6], 32  }
  0xdd   :  { %328 = vsyncadd [#allocation6], 4294967264 }
  0xde   :  { %253 = vsyncpa [#allocation5], 1 }
  0xdf   :  { %254 = vsyncpa [#allocation8], 1 }
  0xe0   :  { %255 = vsyncpa [#allocation6], 1 }

</bundles_post_ra>
